<compile_context>
chip_gen: v6e
topology: v6e:2x2x1
jax: 0.10.0
libtpu: 0.0.40
codegen_flags: <defaults>
</compile_context>

<pallas_src>
import functools

import jax
import jax.numpy as jnp
from jax.experimental import pallas as pl
from jax.experimental.pallas import tpu as pltpu


# ----------------------------------------------------------------------------
# Helpers
# ----------------------------------------------------------------------------
def _round_up(x, m):
    return (x + m - 1) // m * m


def _pick_hw_tile(hw, max_tile=512):
    """Largest divisor of hw that is <= max_tile (prefer a multiple of 8).

    Keeping the tile a divisor of H*W means every grid step lies entirely inside
    one image, so the pool accumulator needs no row masking.  max_tile=512 keeps
    double-buffered tiles well under the scoped-VMEM limit on every TPU
    generation (v7x included); raise it (and vmem_limit_bytes) on v5e/v6e if the
    DMA is exposed.
    """
    if hw <= max_tile:
        return hw
    for t in range(max_tile, 7, -1):
        if hw % t == 0 and t % 8 == 0:
            return t
    for t in range(max_tile, 0, -1):
        if hw % t == 0:
            return t
    return hw


def _im2col_3x3(x_nhwc):
    """x_nhwc [B,H,W,C] -> patches [B, H*W, 9*C] (pad=1, stride=1)."""
    B, H, W, C = x_nhwc.shape
    xp = jnp.pad(x_nhwc, ((0, 0), (1, 1), (1, 1), (0, 0)))
    cols = []
    for ki in range(3):
        for kj in range(3):
            cols.append(xp[:, ki:ki + H, kj:kj + W, :])   # [B,H,W,C]
    patches = jnp.stack(cols, axis=3)                     # [B,H,W,9,C]
    return patches.reshape(B, H * W, 9 * C)


# ----------------------------------------------------------------------------
# Fused kernel: conv(matmul) + BN + ReLU + pool-accumulate, FC + softmax epilogue
#   grid = (B, H*W // TILE_HW); outputs are resident (constant index_map) and
#   written only in the pl.when(last) epilogue.
# ----------------------------------------------------------------------------
def fused_forward_kernel(patches_ref, w_ref, scale_ref, bias_ref,
                         wfc_ref, bfc_ref,
                         logits_ref, probs_ref,
                         pooled_acc,
                         *, inv_hw):
    b = pl.program_id(0)
    t = pl.program_id(1)

    @pl.when(jnp.logical_and(b == 0, t == 0))
    def _():
        pooled_acc[...] = jnp.zeros_like(pooled_acc)

    # conv-as-matmul: bf16 inputs, f32 accumulation on the MXU.
    acc = jnp.dot(patches_ref[...], w_ref[...],
                  preferred_element_type=jnp.float32)        # [TILE_HW, Cout_pad]
    y = jnp.maximum(acc * scale_ref[...] + bias_ref[...], 0.0)   # folded BN + ReLU

    # Global-average-pool partial sum for image `b` (one-hot row select so no
    # dynamic sublane indexing is needed).
    partial = jnp.sum(y, axis=0, keepdims=True)              # [1, Cout_pad]
    row_ids = jax.lax.broadcasted_iota(jnp.int32, pooled_acc.shape, 0)
    mask = (row_ids == b).astype(jnp.float32)                # [B, Cout_pad]
    pooled_acc[...] = pooled_acc[...] + mask * partial

    last = jnp.logical_and(b == pl.num_programs(0) - 1,
                           t == pl.num_programs(1) - 1)

    @pl.when(last)
    def _():
        pooled = pooled_acc[...] * inv_hw                    # mean over H*W
        logits = jnp.dot(pooled, wfc_ref[...],
                         preferred_element_type=jnp.float32) + bfc_ref[...]
        logits_ref[...] = logits
        m = jnp.max(logits, axis=-1, keepdims=True)
        e = jnp.exp(logits - m)
        denom = jnp.sum(e, axis=-1, keepdims=True)
        probs_ref[...] = e * pl.reciprocal(denom, approx=True)


# ----------------------------------------------------------------------------
# Wrapper
# ----------------------------------------------------------------------------
def domain_specific_nn_forward(x_nchw, domain, params):
    """Forward of DomainSpecificNN.

    x_nchw: [B, C, H, W] float32 (PyTorch layout)
    domain: python int domain index
    params: dict of stacked per-domain parameters
    Returns (logits, end_points) with end_points = {'Predictions': softmax(logits)}.
    """
    B, C, H, W = x_nchw.shape
    HW = H * W
    eps = 1e-5

    # --- per-domain parameter selection (mirrors self.features[domain]) ---
    conv_w = params["conv_w"][domain]        # [Cout, Cin, 3, 3]
    bn_gamma = params["bn_gamma"][domain]    # [Cout]
    bn_beta = params["bn_beta"][domain]      # [Cout]
    bn_mean = params["bn_mean"][domain]      # [Cout]
    bn_var = params["bn_var"][domain]        # [Cout]
    fc_w = params["fc_w"][domain]            # [NC, Cout]
    fc_b = params["fc_b"][domain]            # [NC]

    Cout = conv_w.shape[0]
    NC = fc_w.shape[0]

    K = 9 * C
    K_pad = _round_up(K, 128)
    Cout_pad = _round_up(Cout, 128)
    NC_pad = _round_up(NC, 128)

    # --- glue: NCHW->NHWC, im2col, lane padding, bf16 cast, BN folding ---
    x_nhwc = jnp.transpose(x_nchw, (0, 2, 3, 1)).astype(jnp.float32)
    patches = _im2col_3x3(x_nhwc)                                   # [B, HW, K]
    patches = jnp.pad(patches, ((0, 0), (0, 0), (0, K_pad - K)))
    patches = patches.astype(jnp.bfloat16)

    # conv weight [Cout, Cin, 3, 3] -> [ki, kj, Cin, Cout] -> [K, Cout] -> padded
    w_mat = jnp.transpose(conv_w, (2, 3, 1, 0)).reshape(K, Cout)
    w_mat = jnp.pad(w_mat, ((0, K_pad - K), (0, Cout_pad - Cout))).astype(jnp.bfloat16)

    inv_std = 1.0 / jnp.sqrt(bn_var + eps)
    bn_scale = bn_gamma * inv_std
    bn_bias = bn_beta - bn_mean * bn_scale
    bn_scale = jnp.pad(bn_scale, (0, Cout_pad - Cout)).reshape(1, Cout_pad)
    bn_bias = jnp.pad(bn_bias, (0, Cout_pad - Cout)).reshape(1, Cout_pad)
    bn_scale = bn_scale.astype(jnp.float32)
    bn_bias = bn_bias.astype(jnp.float32)

    # fc weight [NC, Cout] -> [Cout, NC] -> padded; padded class columns get a
    # -1e30 bias so they receive ~0 probability mass in the softmax.
    wfc = jnp.transpose(fc_w, (1, 0))
    wfc = jnp.pad(wfc, ((0, Cout_pad - Cout), (0, NC_pad - NC))).astype(jnp.float32)
    bfc = jnp.pad(fc_b, (0, NC_pad - NC), constant_values=-1e30)
    bfc = bfc.reshape(1, NC_pad).astype(jnp.float32)

    TILE_HW = _pick_hw_tile(HW)
    grid = (B, HW // TILE_HW)

    kernel = functools.partial(fused_forward_kernel, inv_hw=1.0 / float(HW))

    logits_pad, probs_pad = pl.pallas_call(
        kernel,
        out_shape=(
            jax.ShapeDtypeStruct((B, NC_pad), jnp.float32),
            jax.ShapeDtypeStruct((B, NC_pad), jnp.float32),
        ),
        grid=grid,
        in_specs=[
            pl.BlockSpec((None, TILE_HW, K_pad), lambda b, t: (b, t, 0)),  # patches tile
            pl.BlockSpec((K_pad, Cout_pad), lambda b, t: (0, 0)),          # conv weight
            pl.BlockSpec((1, Cout_pad), lambda b, t: (0, 0)),              # BN scale
            pl.BlockSpec((1, Cout_pad), lambda b, t: (0, 0)),              # BN bias
            pl.BlockSpec((Cout_pad, NC_pad), lambda b, t: (0, 0)),         # FC weight
            pl.BlockSpec((1, NC_pad), lambda b, t: (0, 0)),                # FC bias
        ],
        out_specs=(
            pl.BlockSpec((B, NC_pad), lambda b, t: (0, 0)),
            pl.BlockSpec((B, NC_pad), lambda b, t: (0, 0)),
        ),
        scratch_shapes=[pltpu.VMEM((B, Cout_pad), jnp.float32)],   # pooled-sum accumulator
        compiler_params=pltpu.CompilerParams(
            dimension_semantics=("arbitrary", "arbitrary")),
    )(patches, w_mat, bn_scale, bn_bias, wfc, bfc)

    logits = logits_pad[:, :NC]
    probs = probs_pad[:, :NC]
    return logits, {"Predictions": probs}


# ----------------------------------------------------------------------------
# Pure-JAX reference (for correctness check only)
# ----------------------------------------------------------------------------
def reference_forward(x_nchw, domain, params):
    eps = 1e-5
    conv_w = params["conv_w"][domain]
    bn_gamma = params["bn_gamma"][domain]
    bn_beta = params["bn_beta"][domain]
    bn_mean = params["bn_mean"][domain]
    bn_var = params["bn_var"][domain]
    fc_w = params["fc_w"][domain]
    fc_b = params["fc_b"][domain]

    x_nhwc = jnp.transpose(x_nchw, (0, 2, 3, 1)).astype(jnp.float32)
    k_hwio = jnp.transpose(conv_w, (2, 3, 1, 0))                  # [3,3,Cin,Cout]
    y = jax.lax.conv_general_dilated(
        x_nhwc, k_hwio, window_strides=(1, 1), padding="SAME",
        dimension_numbers=("NHWC", "HWIO", "NHWC"))
    scale = bn_gamma / jnp.sqrt(bn_var + eps)
    bias = bn_beta - bn_mean * scale
    y = jnp.maximum(y * scale + bias, 0.0)
    pooled = jnp.mean(y, axis=(1, 2))                             # [B, Cout]
    logits = pooled @ fc_w.T + fc_b
    probs = jax.nn.softmax(logits, axis=-1)
    return logits, probs


# ----------------------------------------------------------------------------
# Deterministic parameter init (all domains share weights, as in the PyTorch
# module which appends the same backbone/classifier object N times).
# ----------------------------------------------------------------------------
def init_params(key, num_domains, cin, cout, num_classes):
    k1, k2, k3 = jax.random.split(key, 3)
    conv_w = jax.random.normal(k1, (cout, cin, 3, 3), jnp.float32) * 0.1
    bn_gamma = jnp.ones((cout,), jnp.float32)
    bn_beta = jnp.zeros((cout,), jnp.float32)
    bn_mean = jax.random.normal(k2, (cout,), jnp.float32) * 0.05
    bn_var = jnp.abs(jax.random.normal(k3, (cout,), jnp.float32)) * 0.1 + 1.0
    k4, k5 = jax.random.split(k1, 2)
    fc_w = jax.random.normal(k4, (num_classes, cout), jnp.float32) * 0.1
    fc_b = jax.random.normal(k5, (num_classes,), jnp.float32) * 0.01

    def rep(a):
        return jnp.broadcast_to(a, (num_domains,) + a.shape)

    return {
        "conv_w": rep(conv_w),
        "bn_gamma": rep(bn_gamma),
        "bn_beta": rep(bn_beta),
        "bn_mean": rep(bn_mean),
        "bn_var": rep(bn_var),
        "fc_w": rep(fc_w),
        "fc_b": rep(fc_b),
    }


if __name__ == "__main__":
    B, C, H, W = 2, 4, 16, 16
    NUM_DOMAINS = 3
    COUT = 8
    NUM_CLASSES = 7

    key = jax.random.PRNGKey(0)
    kx, kp = jax.random.split(key)
    x = jax.random.normal(kx, (B, C, H, W), jnp.float32)   # NCHW input (PyTorch layout)
    params = init_params(kp, NUM_DOMAINS, C, COUT, NUM_CLASSES)

    domain = 1
    logits, end_points = domain_specific_nn_forward(x, domain, params)
    logits = jax.block_until_ready(logits)
    probs = jax.block_until_ready(end_points["Predictions"])

    assert logits.shape == (B, NUM_CLASSES)
    assert probs.shape == (B, NUM_CLASSES)
    # softmax rows sum to ~1 (approx reciprocal -> relaxed tolerance)
    assert jnp.allclose(jnp.sum(probs, axis=-1), 1.0, atol=2e-3)

    # compare against pure-JAX reference (bf16 matmul -> generous tolerance)
    ref_logits, ref_probs = reference_forward(x, domain, params)
    assert jnp.allclose(logits, ref_logits, atol=2e-2, rtol=2e-2), (
        "logits mismatch vs reference")
    assert jnp.allclose(probs, ref_probs, atol=2e-2), "probs mismatch vs reference"

    print("KERNEL_OK")
</pallas_src>

<mosaic_0001>
module attributes {stable_mosaic.version = 11 : i64} {
  func.func @fused_forward_kernel(%arg0: i32, %arg1: i32, %arg2: memref<1x256x128xbf16, #tpu.memory_space<vmem>>, %arg3: memref<128x128xbf16, #tpu.memory_space<vmem>>, %arg4: memref<1x128xf32, #tpu.memory_space<vmem>>, %arg5: memref<1x128xf32, #tpu.memory_space<vmem>>, %arg6: memref<128x128xf32, #tpu.memory_space<vmem>>, %arg7: memref<1x128xf32, #tpu.memory_space<vmem>>, %arg8: memref<2x128xf32, #tpu.memory_space<vmem>>, %arg9: memref<2x128xf32, #tpu.memory_space<vmem>>, %arg10: memref<2x128xf32, #tpu.memory_space<vmem>>) attributes {dimension_semantics = [#tpu.dimension_semantics<arbitrary>, #tpu.dimension_semantics<arbitrary>], iteration_bounds = array<i64: 2, 1>, scalar_prefetch = 0 : i64, scratch_operands = 1 : i64, tpu.core_type = #tpu.core_type<tc>, window_params = [{transform_indices = @transform_0, window_bounds = array<i64: 1, 256, 128>}, {pipeline_mode = #tpu.pipeline_mode<synchronous>, transform_indices = @transform_1, window_bounds = array<i64: 128, 128>}, {pipeline_mode = #tpu.pipeline_mode<synchronous>, transform_indices = @transform_2, window_bounds = array<i64: 1, 128>}, {pipeline_mode = #tpu.pipeline_mode<synchronous>, transform_indices = @transform_3, window_bounds = array<i64: 1, 128>}, {pipeline_mode = #tpu.pipeline_mode<synchronous>, transform_indices = @transform_4, window_bounds = array<i64: 128, 128>}, {pipeline_mode = #tpu.pipeline_mode<synchronous>, transform_indices = @transform_5, window_bounds = array<i64: 1, 128>}, {pipeline_mode = #tpu.pipeline_mode<synchronous>, transform_indices = @transform_6, window_bounds = array<i64: 2, 128>}, {pipeline_mode = #tpu.pipeline_mode<synchronous>, transform_indices = @transform_7, window_bounds = array<i64: 2, 128>}]} {
    %c0_i32 = arith.constant 0 : i32
    %0 = arith.cmpi eq, %arg0, %c0_i32 : i32
    %c0_i32_0 = arith.constant 0 : i32
    %1 = arith.cmpi eq, %arg1, %c0_i32_0 : i32
    %2 = arith.andi %0, %1 : i1
    %3 = arith.extui %2 : i1 to i32
    %c0_i32_1 = arith.constant 0 : i32
    %4 = arith.cmpi ne, %3, %c0_i32_1 : i32
    scf.if %4 {
      %cst_18 = arith.constant 0.000000e+00 : f32
      %34 = vector.broadcast %cst_18 : f32 to vector<2x128xf32>
      %c0_19 = arith.constant 0 : index
      %c0_20 = arith.constant 0 : index
      %35 = vector.load %arg10[%c0_19, %c0_20] : memref<2x128xf32, #tpu.memory_space<vmem>>, vector<2x128xf32>
      tpu.vector_store %arg10[%c0_19, %c0_20], %34 {strides = array<i32>} : memref<2x128xf32, #tpu.memory_space<vmem>>, vector<2x128xf32>,
    } else {
    }
    %c0 = arith.constant 0 : index
    %c0_2 = arith.constant 0 : index
    %c0_3 = arith.constant 0 : index
    %5 = vector.load %arg2[%c0, %c0_2, %c0_3] : memref<1x256x128xbf16, #tpu.memory_space<vmem>>, vector<1x256x128xbf16>
    %6 = vector.shape_cast %5 : vector<1x256x128xbf16> to vector<256x128xbf16>
    %c0_4 = arith.constant 0 : index
    %c0_5 = arith.constant 0 : index
    %7 = vector.load %arg3[%c0_4, %c0_5] : memref<128x128xbf16, #tpu.memory_space<vmem>>, vector<128x128xbf16>
    %cst = arith.constant dense<0.000000e+00> : vector<256x128xf32>
    %8 = tpu.matmul %6, %7, %cst {dimension_numbers = #tpu.dot_dimension_numbers<[1], [0], [0], [1], [0, 0, 1, 1], [], []>} : vector<256x128xbf16>, vector<128x128xbf16>, vector<256x128xf32> -> vector<256x128xf32>
    %c0_6 = arith.constant 0 : index
    %c0_7 = arith.constant 0 : index
    %9 = vector.load %arg4[%c0_6, %c0_7] : memref<1x128xf32, #tpu.memory_space<vmem>>, vector<1x128xf32>
    %10 = vector.broadcast %9 : vector<1x128xf32> to vector<256x128xf32>
    %11 = arith.mulf %8, %10 : vector<256x128xf32>
    %c0_8 = arith.constant 0 : index
    %c0_9 = arith.constant 0 : index
    %12 = vector.load %arg5[%c0_8, %c0_9] : memref<1x128xf32, #tpu.memory_space<vmem>>, vector<1x128xf32>
    %13 = vector.broadcast %12 : vector<1x128xf32> to vector<256x128xf32>
    %14 = arith.addf %11, %13 : vector<256x128xf32>
    %cst_10 = arith.constant 0.000000e+00 : f32
    %15 = vector.broadcast %cst_10 : f32 to vector<256x128xf32>
    %16 = arith.maximumf %14, %15 : vector<256x128xf32>
    %cst_11 = arith.constant dense<0.000000e+00> : vector<128xf32>
    %17 = vector.multi_reduction <add>, %16, %cst_11 [0] : vector<256x128xf32> to vector<128xf32>
    %18 = vector.shape_cast %17 : vector<128xf32> to vector<1x128xf32>
    %19 = tpu.iota {dimensions = array<i32: 0>} : vector<2x128xi32>
    %20 = vector.broadcast %arg0 : i32 to vector<2x128xi32>
    %21 = arith.cmpi eq, %19, %20 : vector<2x128xi32>
    %22 = arith.extui %21 : vector<2x128xi1> to vector<2x128xi32>
    %23 = arith.sitofp %22 : vector<2x128xi32> to vector<2x128xf32>
    %c0_12 = arith.constant 0 : index
    %c0_13 = arith.constant 0 : index
    %24 = vector.load %arg10[%c0_12, %c0_13] : memref<2x128xf32, #tpu.memory_space<vmem>>, vector<2x128xf32>
    %25 = vector.broadcast %18 : vector<1x128xf32> to vector<2x128xf32>
    %26 = arith.mulf %23, %25 : vector<2x128xf32>
    %27 = arith.addf %24, %26 : vector<2x128xf32>
    %c0_14 = arith.constant 0 : index
    %c0_15 = arith.constant 0 : index
    %28 = vector.load %arg10[%c0_14, %c0_15] : memref<2x128xf32, #tpu.memory_space<vmem>>, vector<2x128xf32>
    tpu.vector_store %arg10[%c0_14, %c0_15], %27 {strides = array<i32>} : memref<2x128xf32, #tpu.memory_space<vmem>>, vector<2x128xf32>,
    %c1_i32 = arith.constant 1 : i32
    %29 = arith.cmpi eq, %arg0, %c1_i32 : i32
    %c0_i32_16 = arith.constant 0 : i32
    %30 = arith.cmpi eq, %arg1, %c0_i32_16 : i32
    %31 = arith.andi %29, %30 : i1
    %32 = arith.extui %31 : i1 to i32
    %c0_i32_17 = arith.constant 0 : i32
    %33 = arith.cmpi ne, %32, %c0_i32_17 : i32
    scf.if %33 {
      %c0_18 = arith.constant 0 : index
      %c0_19 = arith.constant 0 : index
      %34 = vector.load %arg10[%c0_18, %c0_19] : memref<2x128xf32, #tpu.memory_space<vmem>>, vector<2x128xf32>
      %cst_20 = arith.constant 3.906250e-03 : f32
      %35 = vector.broadcast %cst_20 : f32 to vector<2x128xf32>
      %36 = arith.mulf %34, %35 : vector<2x128xf32>
      %c0_21 = arith.constant 0 : index
      %c0_22 = arith.constant 0 : index
      %37 = vector.load %arg6[%c0_21, %c0_22] : memref<128x128xf32, #tpu.memory_space<vmem>>, vector<128x128xf32>
      %cst_23 = arith.constant dense<0.000000e+00> : vector<2x128xf32>
      %38 = tpu.matmul %36, %37, %cst_23 {dimension_numbers = #tpu.dot_dimension_numbers<[1], [0], [0], [1], [0, 0, 1, 1], [], []>} : vector<2x128xf32>, vector<128x128xf32>, vector<2x128xf32> -> vector<2x128xf32>
      %c0_24 = arith.constant 0 : index
      %c0_25 = arith.constant 0 : index
      %39 = vector.load %arg7[%c0_24, %c0_25] : memref<1x128xf32, #tpu.memory_space<vmem>>, vector<1x128xf32>
      %40 = vector.broadcast %39 : vector<1x128xf32> to vector<2x128xf32>
      %41 = arith.addf %38, %40 : vector<2x128xf32>
      %c0_26 = arith.constant 0 : index
      %c0_27 = arith.constant 0 : index
      %42 = vector.load %arg8[%c0_26, %c0_27] : memref<2x128xf32, #tpu.memory_space<vmem>>, vector<2x128xf32>
      tpu.vector_store %arg8[%c0_26, %c0_27], %41 {strides = array<i32>} : memref<2x128xf32, #tpu.memory_space<vmem>>, vector<2x128xf32>,
      %cst_28 = arith.constant dense<0xFF800000> : vector<2xf32>
      %43 = vector.multi_reduction <maximumf>, %41, %cst_28 [1] : vector<2x128xf32> to vector<2xf32>
      %44 = vector.shape_cast %43 : vector<2xf32> to vector<2x1xf32>
      %45 = vector.broadcast %44 : vector<2x1xf32> to vector<2x128xf32>
      %46 = arith.subf %41, %45 : vector<2x128xf32>
      %47 = math.exp %46 : vector<2x128xf32>
      %cst_29 = arith.constant dense<0.000000e+00> : vector<2xf32>
      %48 = vector.multi_reduction <add>, %47, %cst_29 [1] : vector<2x128xf32> to vector<2xf32>
      %49 = vector.shape_cast %48 : vector<2xf32> to vector<2x1xf32>
      %50 = tpu.reciprocal %49 {approx = true} : vector<2x1xf32> -> vector<2x1xf32>
      %51 = vector.broadcast %50 : vector<2x1xf32> to vector<2x128xf32>
      %52 = arith.mulf %47, %51 : vector<2x128xf32>
      %c0_30 = arith.constant 0 : index
      %c0_31 = arith.constant 0 : index
      %53 = vector.load %arg9[%c0_30, %c0_31] : memref<2x128xf32, #tpu.memory_space<vmem>>, vector<2x128xf32>
      tpu.vector_store %arg9[%c0_30, %c0_31], %52 {strides = array<i32>} : memref<2x128xf32, #tpu.memory_space<vmem>>, vector<2x128xf32>,
    } else {
    }
    return
  }
  func.func @transform_0(%arg0: i32, %arg1: i32) -> (i32, i32, i32) {
    %c0_i32 = arith.constant 0 : i32
    %c0_i32_0 = arith.constant 0 : i32
    return %arg0, %arg1, %c0_i32 : i32, i32, i32
  }
  func.func @transform_1(%arg0: i32, %arg1: i32) -> (i32, i32) {
    %c0_i32 = arith.constant 0 : i32
    %c0_i32_0 = arith.constant 0 : i32
    %c0_i32_1 = arith.constant 0 : i32
    return %c0_i32, %c0_i32_0 : i32, i32
  }
  func.func @transform_2(%arg0: i32, %arg1: i32) -> (i32, i32) {
    %c0_i32 = arith.constant 0 : i32
    %c0_i32_0 = arith.constant 0 : i32
    %c0_i32_1 = arith.constant 0 : i32
    return %c0_i32, %c0_i32_0 : i32, i32
  }
  func.func @transform_3(%arg0: i32, %arg1: i32) -> (i32, i32) {
    %c0_i32 = arith.constant 0 : i32
    %c0_i32_0 = arith.constant 0 : i32
    %c0_i32_1 = arith.constant 0 : i32
    return %c0_i32, %c0_i32_0 : i32, i32
  }
  func.func @transform_4(%arg0: i32, %arg1: i32) -> (i32, i32) {
    %c0_i32 = arith.constant 0 : i32
    %c0_i32_0 = arith.constant 0 : i32
    %c0_i32_1 = arith.constant 0 : i32
    return %c0_i32, %c0_i32_0 : i32, i32
  }
  func.func @transform_5(%arg0: i32, %arg1: i32) -> (i32, i32) {
    %c0_i32 = arith.constant 0 : i32
    %c0_i32_0 = arith.constant 0 : i32
    %c0_i32_1 = arith.constant 0 : i32
    return %c0_i32, %c0_i32_0 : i32, i32
  }
  func.func @transform_6(%arg0: i32, %arg1: i32) -> (i32, i32) {
    %c0_i32 = arith.constant 0 : i32
    %c0_i32_0 = arith.constant 0 : i32
    %c0_i32_1 = arith.constant 0 : i32
    return %c0_i32, %c0_i32_0 : i32, i32
  }
  func.func @transform_7(%arg0: i32, %arg1: i32) -> (i32, i32) {
    %c0_i32 = arith.constant 0 : i32
    %c0_i32_0 = arith.constant 0 : i32
    %c0_i32_1 = arith.constant 0 : i32
    return %c0_i32, %c0_i32_0 : i32, i32
  }
}

</mosaic_0001>

<bundles_post_ra>
// kernel: tpu_custom_call.1
= control target key start
LH: loop header
LB: loop body
LE: loop exit
PB: predicated region body
PF: predicated region fallthrough
CT: control target
= control target key end

     0   :  { %13 = vsyncpa [#allocation4], 0  ;;  %s1920_s0 = inlined_call_operand.hbm [shape: bf16[2,256,128], index: 0, kind: input, shape index: {}]   ;;  %s1921_s1 = inlined_call_operand.hbm [shape: bf16[128,128], index: 1, kind: input, shape index: {}]   ;;  %s1922_s2 = inlined_call_operand.vmem [shape: f32[1,128], index: 2, kind: input, shape index: {}]   ;;  %s1923_s3 = inlined_call_operand.vmem [shape: f32[1,128], index: 3, kind: input, shape index: {}]   ;;  %s1924_s4 = inlined_call_operand.hbm [shape: f32[128,128], index: 4, kind: input, shape index: {}]   ;;  %s1925_s5 = inlined_call_operand.vmem [shape: f32[1,128], index: 5, kind: input, shape index: {}]   ;;  %s1926_s6 = inlined_call_operand.hbm [shape: f32[2,128], index: 6, kind: output, shape index: {0}]   ;;  %s1927_s7 = inlined_call_operand.hbm [shape: f32[2,128], index: 7, kind: output, shape index: {1}]  }
   0x1   :  { %15 = vsyncpa [#allocation4 + $0x1], 0 }
   0x2   :  { %16 = vsyncpa [#allocation7], 0 }
   0x3   :  { %17 = vsyncpa [#allocation5], 0 }
   0x4   :  { %18 = vsyncpa [#allocation11], 0  ;;  %s1634_s24 = smov 0   ;;  %s1636_s25 = smov 0  }
   0x5   :  { %s1638_s26 = smov 0   ;;  %s1640_s27 = smov 0  }
   0x6   :  { %s1642_s28 = smov 0   ;;  %s1644_s29 = smov 0  }
   0x7 LB: > { %s1928_s30 = sadd.s32 4294967295, %s1579_s29   ;;  %p58_p0 = scmp.ne.s32.totalorder %s1563_s25, %s1559_s24  ;;  %s1579_s29 = sphi %s1644_s29, %s24_s29   ;;  %s1575_s28 = sphi %s1642_s28, %s1944_s28   ;;  %s1571_s27 = sphi %s1640_s27, %s1943_s27   ;;  %s1567_s26 = sphi %s1638_s26, %s1942_s26   ;;  %s1563_s25 = sphi %s1636_s25, %s1941_s25   ;;  %s1559_s24 = sphi %s1634_s24, %s1940_s24  }
   0x8   : > { %p1666_p1 = scmp.eq.s32.totalorder %s1928_s30, 0  ;;  %p1073_p2 = scmp.ge.s32.totalorder %s1579_s29, 1 }
   0x9   : > { %p216_p3 = scmp.lt.s32.totalorder %s1579_s29, 3  ;;  %s1581_s11 = smov [#allocation6]  }
   0xa   : > { %p1674_p4 = por %p1666_p1, %p58_p0  ;;  %s228_s12 = sshll.u32 %s1581_s11, 4  ;;  %s229_s12 = int_to_ptr.vmem [resolvable:$true] %s228_s12 }
   0xb   : > { %p1678_p5 = pnand %p1073_p2, %p216_p3  ;;  %s1582_s14 = smov [#allocation8]  }
   0xc   : > { %s247_s15 = sshll.u32 %s1582_s14, 4  ;;  %s1400_s16 = scalar_lea.vmem %s229_s12, 1024  ;;  %s248_s15 = int_to_ptr.vmem [resolvable:$true] %s247_s15 }
   0xd   : > { %p1281_p6 = pneg %p1678_p5  ;;  %p1401_p9 = scmp.ne.s32.totalorder %s229_s12, %s1400_s16 }
   0xe   : > { %p1408_p12 = scmp.lt.s32.totalorder %s229_s12, %s229_s12  ;;  %p1409_p13 = scmp.lt.s32.totalorder %s1400_s16, %s1400_s16 }
   0xf   : > { %p1686_p7 = pnand %p1281_p6, %p1666_p1 }
  0x10   : > { %p1410_p0 = por %p1409_p13, %p1408_p12 }
  0x11   : > { %p1391_p8 = pneg %p1686_p7 }
  0x13   : > { %p1403_p10 = pnand %p1401_p9, %p1391_p8 }
  0x15   : > { %p1404_p11 = pneg %p1403_p10 }
  0x17   : > { %p1411_p2 = pnand %p1410_p0, %p1404_p11 }
  0x19   : > { %1414 = shalt.err (!%p1411_p2)
}
  0x1a   : > { %s1929_s17 = smov 64   ;;  %s1930_s18 = smov 4  }
  0x1b   : > { %1284 = dma.hbm_to_vmem [thread:$0]  (!%p1686_p7), %s1921_s1, 1024, %s229_s12, [#allocation7], %s1929_s17, %s1929_s17, %s1930_s18  }
  0x1c   : > { %s1426_s21 = scalar_lea.vmem %s248_s15, 2048  ;;  %p1434_p10 = scmp.lt.s32.totalorder %s248_s15, %s248_s15 }
  0x1d   : > { %p1427_p3 = scmp.ne.s32.totalorder %s248_s15, %s1426_s21  ;;  %p1435_p11 = scmp.lt.s32.totalorder %s1426_s21, %s1426_s21 }
  0x1f   : > { %p1429_p6 = pnand %p1427_p3, %p1391_p8  ;;  %p1436_p12 = por %p1435_p11, %p1434_p10 }
  0x21   : > { %p1430_p9 = pneg %p1429_p6 }
  0x23   : > { %p1437_p13 = pnand %p1436_p12, %p1430_p9 }
  0x25   : > { %1440 = shalt.err (!%p1437_p13)
}
  0x26   : > { %s1585_s22 = smov 128   ;;  %s1586_s23 = smov 8  }
  0x27   : > { %1287 = dma.hbm_to_vmem [thread:$0]  (!%p1686_p7), %s1924_s4, 2048, %s248_s15, [#allocation7], %s1585_s22, %s1585_s22, %s1586_s23  }
  0x28   : > { %s36_s12 = sadd.s32 1, %s1575_s28  ;;  %s45_s14 = sadd.s32 1, %s1567_s26 }
  0x29   : > { %p38_p8 = scmp.ge.s32.totalorder %s36_s12, 2  ;;  %p52_p0 = scmp.ne.s32.totalorder %s1567_s26, %s1563_s25 }
  0x2a   : > { %p53_p2 = scmp.eq.s32.totalorder %s1579_s29, 0  ;;  %p1294_p3 = scmp.lt.s32.totalorder %s1579_s29, 2 }
  0x2b   : > { %s1946_s12 = smov (%p38_p8, %s36_s12), 0  ;;  %s264_s16 = sand.u32 1, %s1567_s26  }
  0x2c   : > { %p54_p6 = por %p53_p2, %p52_p0  ;;  %s40_s19 = ssub.s32 %s1575_s28, %s1946_s12 }
  0x2d   : > { %p43_p9 = scmp.eq.s32.totalorder %s40_s19, 0  ;;  %s1077_s20 = sshll.u32 %s264_s16, 7 }
  0x2e   : > { %s1120_s13 = sshll.u32 %s1575_s28, 11  ;;  %s268_s23 = scalar_lea.vmem [#allocation3], %s1077_s20 }
  0x2f   : > { %s1724_s21 = scalar_select %p43_p9, %s1567_s26, %s45_s14  }
  0x30   : > { %s276_s22 = scalar_lea.hbm %s1920_s0, %s1120_s13  ;;  %s277_s11 = sshll.u32 %s268_s23, 4  ;;  %s278_s11 = int_to_ptr.vmem [resolvable:$true] %s277_s11 }
  0x31   : > { %p1731_p7 = pnand %p1294_p3, %p54_p6  ;;  %s265_s17 = scalar_lea.sflag [#allocation4], %s264_s16 }
  0x32   : > { %s1454_s19 = scalar_lea.vmem %s278_s11, 2048  ;;  %s1587_s14 = smov [#allocation3]  }
  0x33   : > { %p1443_p10 = pneg %p1731_p7  ;;  %p1455_p11 = scmp.ne.s32.totalorder %s278_s11, %s1454_s19 }
  0x34   : > { %s1459_s18 = sshll.u32 %s1587_s14, 4  ;;  %s1460_s18 = int_to_ptr.vmem [resolvable:$false] %s1459_s18 }
  0x35   : > { %p1457_p12 = pnand %p1455_p11, %p1443_p10  ;;  %s1461_s13 = scalar_lea.vmem %s1460_s18, 4096 }
  0x36   : > { %p1462_p8 = scmp.lt.s32.totalorder %s278_s11, %s1460_s18  ;;  %p1463_p0 = scmp.lt.s32.totalorder %s1461_s13, %s1454_s19 }
  0x37   : > { %p1458_p13 = pneg %p1457_p12 }
  0x38   : > { %p1464_p2 = por %p1463_p0, %p1462_p8 }
  0x3a   : > { %p1465_p9 = pnand %p1464_p2, %p1458_p13 }
  0x3c   : > { %1468 = shalt.err (!%p1465_p9)
}
  0x3d   : > { %s1936_s20 = smov 4   ;;  %s1937_s24 = smov 64  }
  0x3e   : > { %1291 = dma.hbm_to_vmem [thread:$0]  (!%p1731_p7), %s276_s22, 2048, %s278_s11, %s265_s17, %s1937_s24, %s1937_s24, %s1936_s20  }
  0x3f   : > { %289 = sbr.rel (%p1678_p5) target bundleno = 940 (0x3ac), region = 44  ;;  %s291_s16 = sand.u32 (!%p1678_p5), 1, %s1563_s25  }
  0x40   : > { %s1081_s15 = sshll.u32 (!%p1678_p5), %s291_s16, 7  ;;  %s292_s23 = scalar_lea.sflag (!%p1678_p5), [#allocation4], %s291_s16 }
  0x41   : > { %s1745_s14 = scalar_lea.vmem (!%p1678_p5), [#allocation3], %s1081_s15 }
  0x44   : > { %1542 = dma.done.wait (%p1674_p4), %s292_s23, 2048  }
  0x45   : > { %1544 = vsyncadd (%p1674_p4), %s292_s23, 4294965248 }
  0x46   : > { %1546 = dma.done.wait (%p1666_p1), [#allocation7], 3072  }
  0x47   : > { %1548 = vsyncadd (%p1666_p1), [#allocation7], 4294964224  ;;  %p331_p5 = scmp.eq.s32.totalorder %s1571_s27, 0 }
  0x48   : > { %v1588_v0 = vmov (%p331_p5), 0.0  }
  0x49   : > { %336 = sbr.rel (!%p331_p5) target bundleno = 78 (0x4e), region = 60  ;;  %337 = vst [vmem:[#allocation2] sm:$0x3] (%p331_p5), %v1588_v0 }
  0x4e PF: > { %v1361_v1 = vld [vmem:[#allocation6 + $0x38] sm:$0xff]   ;;  %v1362_v2 = vld [vmem:[#allocation6 + $0x30] sm:$0xff]   ;;  %v1363_v3 = vld [vmem:[#allocation6 + $0x28] sm:$0xff]   ;;  %p848_p1 = scmp.eq.s32.totalorder %s1571_s27, 1 }
  0x4f   : > { %1164 = vmatprep.subr.bf16.mxu0 %v1361_v1  ;;  %1247 = vmatprep.subr.bf16.mxu1 %v1361_v1  ;;  %v1364_v4 = vld [vmem:[#allocation6 + $0x20] sm:$0xff]   ;;  %v1365_v6 = vld [vmem:[#allocation6 + $0x18] sm:$0xff]   ;;  %v1366_v7 = vld [vmem:[#allocation6 + $0x10] sm:$0xff]   ;;  %vm1591_vm1 = vmmov (%p848_p1), 0   ;;  %vm949_vm2 = vcmask (%p848_p1), 1041408  }
  0x50   : > { %1165 = vmatpush3.bf16.msra.mxu0 %v1361_v1  ;;  %1255 = vmatpush3.bf16.msra.mxu1 %v1361_v1  ;;  %v1369_v5 = vld [vmem:[%s1745_s14] sm:$0xff]   ;;  %v1367_v9 = vld [vmem:[#allocation6 + $0x8] sm:$0xff]   ;;  %v1371_v13 = vld [vmem:[%s1745_s14 + $0x10] sm:$0xff]  }
  0x51   : > { %1166 = vmatprep.subr.bf16.mxu0 %v1362_v2  ;;  %1248 = vmatprep.subr.bf16.mxu1 %v1362_v2  ;;  %v1377_v8 = vld [vmem:[%s1745_s14 + $0x40] sm:$0xff]   ;;  %v1370_v11 = vld [vmem:[%s1745_s14 + $0x8] sm:$0xff]   ;;  %v1379_v14 = vld [vmem:[%s1745_s14 + $0x50] sm:$0xff]  }
  0x52   : > { %1180 = vmatprep.mubr.bf16.mxu0 %v1369_v5  ;;  %1196 = vmatprep.mubr.bf16.mxu1 %v1377_v8  ;;  %v1368_v10 = vld [vmem:[#allocation6] sm:$0xff]   ;;  %v1378_v12 = vld [vmem:[%s1745_s14 + $0x48] sm:$0xff]   ;;  %v1372_v15 = vld [vmem:[%s1745_s14 + $0x18] sm:$0xff]  }
  0x53   : > { %v1380_v16 = vld [vmem:[%s1745_s14 + $0x58] sm:$0xff]   ;;  %v1373_v17 = vld [vmem:[%s1745_s14 + $0x20] sm:$0xff]   ;;  %v1374_v19 = vld [vmem:[%s1745_s14 + $0x28] sm:$0xff]  }
  0x54   : > { %1167 = vmatpush3.bf16.msra.mxu0 %v1362_v2  ;;  %1256 = vmatpush3.bf16.msra.mxu1 %v1362_v2  ;;  %v1381_v18 = vld [vmem:[%s1745_s14 + $0x60] sm:$0xff]   ;;  %v1382_v20 = vld [vmem:[%s1745_s14 + $0x68] sm:$0xff]   ;;  %v1375_v21 = vld [vmem:[%s1745_s14 + $0x30] sm:$0xff]  }
  0x55   : > { %1168 = vmatprep.subr.bf16.mxu0 %v1363_v3  ;;  %1249 = vmatprep.subr.bf16.mxu1 %v1363_v3  ;;  %v1383_v22 = vld [vmem:[%s1745_s14 + $0x70] sm:$0xff]   ;;  %v1376_v23 = vld [vmem:[%s1745_s14 + $0x38] sm:$0xff]  }
  0x56   : > { %v1384_v24 = vld [vmem:[%s1745_s14 + $0x78] sm:$0xff]  }
  0x57   : > { %v1778_v27 = vld [vmem:[%s1922_s2] ss:$0 sm:$0xff] }
  0x58   : > { %1169 = vmatpush3.bf16.msra.mxu0 %v1363_v3  ;;  %1257 = vmatpush3.bf16.msra.mxu1 %v1363_v3  ;;  %v1789_v34 = vld [vmem:[%s1923_s3] ss:$0 sm:$0xff] }
  0x59   : > { %1170 = vmatprep.subr.bf16.mxu0 %v1364_v4  ;;  %1250 = vmatprep.subr.bf16.mxu1 %v1364_v4 }
  0x5c   : > { %1171 = vmatpush3.bf16.msra.mxu0 %v1364_v4  ;;  %1258 = vmatpush3.bf16.msra.mxu1 %v1364_v4 }
  0x5d   : > { %1172 = vmatprep.subr.bf16.mxu0 %v1365_v6  ;;  %1251 = vmatprep.subr.bf16.mxu1 %v1365_v6 }
  0x60   : > { %1173 = vmatpush3.bf16.msra.mxu0 %v1365_v6  ;;  %1259 = vmatpush3.bf16.msra.mxu1 %v1365_v6 }
  0x61   : > { %1174 = vmatprep.subr.bf16.mxu0 %v1366_v7  ;;  %1252 = vmatprep.subr.bf16.mxu1 %v1366_v7 }
  0x64   : > { %1175 = vmatpush3.bf16.msra.mxu0 %v1366_v7  ;;  %1260 = vmatpush3.bf16.msra.mxu1 %v1366_v7 }
  0x65   : > { %1176 = vmatprep.subr.bf16.mxu0 %v1367_v9  ;;  %1253 = vmatprep.subr.bf16.mxu1 %v1367_v9 }
  0x68   : > { %1177 = vmatpush3.bf16.msra.mxu0 %v1367_v9  ;;  %1261 = vmatpush3.bf16.msra.mxu1 %v1367_v9 }
  0x69   : > { %1178 = vmatprep.subr.bf16.mxu0 %v1368_v10  ;;  %1254 = vmatprep.subr.bf16.mxu1 %v1368_v10 }
  0x6c   : > { %1179 = vmatpush3.bf16.msra.mxu0 %v1368_v10  ;;  %1262 = vmatpush3.bf16.msra.mxu1 %v1368_v10 }
  0x6f   : > { %1181 = vmatmul.mubr.bf16.vlgmr.msra.gmra.mxu0 %v1370_v11  ;;  %1197 = vmatmul.mubr.bf16.vlgmr.msra.gmra.mxu1 %v1378_v12 }
  0x70   : > { %1184 = vmatprep.mubr.bf16.mxu0 %v1371_v13  ;;  %1200 = vmatprep.mubr.bf16.mxu1 %v1379_v14 }
  0x77   : > { %1185 = vmatmul.mubr.bf16.gmra.mxu0 %v1372_v15  ;;  %1201 = vmatmul.mubr.bf16.gmra.mxu1 %v1380_v16 }
  0x78   : > { %1188 = vmatprep.mubr.bf16.mxu0 %v1373_v17  ;;  %1204 = vmatprep.mubr.bf16.mxu1 %v1381_v18 }
  0x7f   : > { %1189 = vmatmul.mubr.bf16.gmra.mxu0 %v1374_v19  ;;  %1205 = vmatmul.mubr.bf16.gmra.mxu1 %v1382_v20 }
  0x80   : > { %1192 = vmatprep.mubr.bf16.mxu0 %v1375_v21  ;;  %1208 = vmatprep.mubr.bf16.mxu1 %v1383_v22 }
  0x87   : > { %1193 = vmatmul.mubr.bf16.gmra.mxu0 %v1376_v23  ;;  %1209 = vmatmul.mubr.bf16.gmra.mxu1 %v1384_v24 }
 0x12f   : > { %v1182_v25 = vpop.f32.mrf.mxu0  ;;  %v1773_v26 = vpop.f32.mrf.mxu1 }
 0x130   : > { %v700_v33 = vmul.f32 %v1182_v25, %v1778_v27 }
 0x131   : > { %v564_v28 = vpop.f32.mrf.mxu0  ;;  %v1780_v29 = vpop.f32.mrf.mxu1 }
 0x132   : > { %v698_v30 = vmul.f32 %v1778_v27, %v564_v28  ;;  %v739_v41 = vadd.f32 %v1789_v34, %v700_v33 }
 0x133   : > { %v1183_v31 = vpop.f32.mrf.mxu0  ;;  %v1783_v32 = vpop.f32.mrf.mxu1 }
 0x134   : > { %v737_v36 = vadd.f32 %v1789_v34, %v698_v30  ;;  %v701_v37 = vmul.f32 %v1183_v31, %v1778_v27  ;;  %v771_v50 = vmax.f32 %v739_v41, 0.0 }
 0x135   : > { %v567_v35 = vpop.f32.mrf.mxu0  ;;  %v1794_v40 = vpop.f32.mrf.mxu1 }
 0x136   : > { %v699_v38 = vmul.f32 %v1778_v27, %v567_v35  ;;  %v769_v44 = vmax.f32 %v737_v36, 0.0  ;;  %v740_v45 = vadd.f32 %v1789_v34, %v701_v37 }
 0x137   : > { %v1186_v39 = vpop.f32.mrf.mxu0  ;;  %v1800_v49 = vpop.f32.mrf.mxu1 }
 0x138   : > { %v738_v42 = vadd.f32 %v1789_v34, %v699_v38  ;;  %v704_v52 = vmul.f32 %v1186_v39, %v1778_v27  ;;  %v772_v55 = vmax.f32 %v740_v45, 0.0  ;;  %v714_v45 = vmul.f32 %v1778_v27, %v1780_v29 }
 0x139   : > { %v580_v43 = vpop.f32.mrf.mxu0  ;;  %v1806_v60 = vpop.f32.mrf.mxu1 }
 0x13a   : > { %v770_v46 = vmax.f32 %v738_v42, 0.0  ;;  %v702_v47 = vmul.f32 %v1778_v27, %v580_v43  ;;  %v743_v61 = vadd.f32 %v1789_v34, %v704_v52  ;;  %v753_v29 = vadd.f32 %v1789_v34, %v714_v45 }
 0x13b   : > { %v1187_v48 = vpop.f32.mrf.mxu0  ;;  %v1812_v7 = vpop.f32.mrf.mxu1 }
 0x13c   : > { %v801_v51 = vadd.f32 %v770_v46, %v769_v44  ;;  %v741_v53 = vadd.f32 %v1789_v34, %v702_v47  ;;  %v705_v57 = vmul.f32 %v1187_v48, %v1778_v27  ;;  %v775_v8 = vmax.f32 %v743_v61, 0.0 }
 0x13d   : > { %v583_v54 = vpop.f32.mrf.mxu0  ;;  %v647_v18 = vpop.f32.mrf.mxu1 }
 0x13e   : > { %v802_v56 = vadd.f32 %v801_v51, %v771_v50  ;;  %v703_v58 = vmul.f32 %v1778_v27, %v583_v54  ;;  %v773_v62 = vmax.f32 %v741_v53, 0.0  ;;  %v744_v3 = vadd.f32 %v1789_v34, %v705_v57 }
 0x13f   : > { %v1190_v59 = vpop.f32.mrf.mxu0  ;;  %v1206_v33 = vpop.f32.mrf.mxu1 }
 0x140   : > { %v803_v63 = vadd.f32 %v802_v56, %v772_v55  ;;  %v742_v0 = vadd.f32 %v1789_v34, %v703_v58  ;;  %v708_v10 = vmul.f32 %v1190_v59, %v1778_v27  ;;  %v776_v13 = vmax.f32 %v744_v3, 0.0 }
 0x141   : > { %v596_v1 = vpop.f32.mrf.mxu0  ;;  %v660_v46 = vpop.f32.mrf.mxu1  ;;  %v715_v55 = vmul.f32 %v1778_v27, %v1794_v40  ;;  %v716_v58 = vmul.f32 %v1773_v26, %v1778_v27  ;;  %v785_v3 = vmax.f32 %v753_v29, 0.0 }
 0x142   : > { %v804_v2 = vadd.f32 %v803_v63, %v773_v62  ;;  %v774_v4 = vmax.f32 %v742_v0, 0.0  ;;  %v706_v5 = vmul.f32 %v1778_v27, %v596_v1  ;;  %v747_v19 = vadd.f32 %v1789_v34, %v708_v10 }
 0x143   : > { %v1191_v6 = vpop.f32.mrf.mxu0  ;;  %v1207_v56 = vpop.f32.mrf.mxu1  ;;  %v717_v63 = vmul.f32 %v1783_v32, %v1778_v27  ;;  %v754_v0 = vadd.f32 %v1789_v34, %v715_v55  ;;  %v720_v32 = vmul.f32 %v1800_v49, %v1778_v27 }
 0x144   : > { %v805_v9 = vadd.f32 %v804_v2, %v774_v4  ;;  %v745_v11 = vadd.f32 %v1789_v34, %v706_v5  ;;  %v709_v15 = vmul.f32 %v1191_v6, %v1778_v27  ;;  %v779_v35 = vmax.f32 %v747_v19, 0.0 }
 0x145   : > { %v599_v12 = vpop.f32.mrf.mxu0  ;;  %v663_v1 = vpop.f32.mrf.mxu1  ;;  %v755_v2 = vadd.f32 %v1789_v34, %v716_v58  ;;  %v718_v4 = vmul.f32 %v1778_v27, %v1806_v60  ;;  %v756_v26 = vadd.f32 %v1789_v34, %v717_v63  ;;  %v786_v5 = vmax.f32 %v754_v0, 0.0 }
 0x146   : > { %v806_v14 = vadd.f32 %v805_v9, %v775_v8  ;;  %v707_v16 = vmul.f32 %v1778_v27, %v599_v12  ;;  %v777_v20 = vmax.f32 %v745_v11, 0.0  ;;  %v748_v25 = vadd.f32 %v1789_v34, %v709_v15 }
 0x147   : > { %v1194_v17 = vpop.f32.mrf.mxu0  ;;  %v719_v8 = vmul.f32 %v1778_v27, %v647_v18  ;;  %v1210_v9 = vpop.f32.mrf.mxu1  ;;  %v787_v10 = vmax.f32 %v755_v2, 0.0  ;;  %v757_v12 = vadd.f32 %v1789_v34, %v718_v4  ;;  %v721_v15 = vmul.f32 %v1812_v7, %v1778_v27 }
 0x148   : > { %v807_v21 = vadd.f32 %v806_v14, %v776_v13  ;;  %v746_v22 = vadd.f32 %v1789_v34, %v707_v16  ;;  %v712_v37 = vmul.f32 %v1194_v17, %v1778_v27  ;;  %v780_v41 = vmax.f32 %v748_v25, 0.0 }
 0x149   : > { %v612_v23 = vpop.f32.mrf.mxu0  ;;  %v788_v13 = vmax.f32 %v756_v26, 0.0  ;;  %v758_v60 = vadd.f32 %v1789_v34, %v719_v8  ;;  %v676_v16 = vpop.f32.mrf.mxu1  ;;  %v759_v17 = vadd.f32 %v1789_v34, %v720_v32  ;;  %v789_v19 = vmax.f32 %v757_v12, 0.0  ;;  %v844_v32 = vld [vmem:[#allocation2] sm:$0x3] }
 0x14a   : > { %v808_v24 = vadd.f32 %v807_v21, %v777_v20  ;;  %v778_v28 = vmax.f32 %v746_v22, 0.0  ;;  %v710_v30 = vmul.f32 %v1778_v27, %v612_v23  ;;  %v751_v47 = vadd.f32 %v1789_v34, %v712_v37 }
 0x14b   : > { %v1195_v31 = vpop.f32.mrf.mxu0  ;;  %v722_v20 = vmul.f32 %v1778_v27, %v660_v46  ;;  %v760_v22 = vadd.f32 %v1789_v34, %v721_v15  ;;  %v790_v49 = vmax.f32 %v758_v60, 0.0  ;;  %v723_v23 = vmul.f32 %v1778_v27, %v663_v1  ;;  %v869_v15 = vld [vmem:[#allocation8 + $0x70] sm:$0xff] (%p848_p1)  ;;  %v868_v60 = vld [vmem:[#allocation8 + $0x68] sm:$0xff] (%p848_p1) }
 0x14c   : > { %v809_v36 = vadd.f32 %v808_v24, %v778_v28  ;;  %v749_v38 = vadd.f32 %v1789_v34, %v710_v30  ;;  %v713_v43 = vmul.f32 %v1195_v31, %v1778_v27  ;;  %v783_v57 = vmax.f32 %v751_v47, 0.0  ;;  %v1211_v24 = vpop.f32.mrf.mxu1 }
 0x14d   : > { %v615_v39 = vpop.f32.mrf.mxu0  ;;  %v791_v25 = vmax.f32 %v759_v17, 0.0  ;;  %v724_v7 = vmul.f32 %v1206_v33, %v1778_v27  ;;  %v761_v30 = vadd.f32 %v1789_v34, %v722_v20  ;;  %v792_v31 = vmax.f32 %v760_v22, 0.0  ;;  %v866_v17 = vld [vmem:[#allocation8 + $0x58] sm:$0xff] (%p848_p1)  ;;  %v863_v20 = vld [vmem:[#allocation8 + $0x40] sm:$0xff] (%p848_p1)  ;;  %v861_v22 = vld [vmem:[#allocation8 + $0x30] sm:$0xff] (%p848_p1) }
 0x14e   : > { %v810_v42 = vadd.f32 %v809_v36, %v779_v35  ;;  %v711_v44 = vmul.f32 %v1778_v27, %v615_v39  ;;  %v781_v48 = vmax.f32 %v749_v38, 0.0  ;;  %v752_v53 = vadd.f32 %v1789_v34, %v713_v43  ;;  %v679_v38 = vpop.f32.mrf.mxu1 }
 0x14f   : > { %v725_v36 = vmul.f32 %v1207_v56, %v1778_v27  ;;  %v762_v37 = vadd.f32 %v1789_v34, %v723_v23  ;;  %v763_v39 = vadd.f32 %v1789_v34, %v724_v7  ;;  %v726_v43 = vmul.f32 %v1778_v27, %v676_v16  ;;  %v867_v16 = vld [vmem:[#allocation8 + $0x60] sm:$0xff] (%p848_p1)  ;;  %v856_v7 = vld [vmem:[#allocation8 + $0x8] sm:$0xff] (%p848_p1) }
 0x150   : > { %v811_v50 = vadd.f32 %v810_v42, %v780_v41  ;;  %v750_v51 = vadd.f32 %v1789_v34, %v711_v44  ;;  %v784_v61 = vmax.f32 %v752_v53, 0.0  ;;  %v793_v41 = vmax.f32 %v761_v30, 0.0  ;;  %v859_v23 = vld [vmem:[#allocation8 + $0x20] sm:$0xff] (%p848_p1) }
 0x151   : > { %v764_v45 = vadd.f32 %v1789_v34, %v725_v36  ;;  %v794_v46 = vmax.f32 %v762_v37, 0.0  ;;  %v727_v33 = vmul.f32 %v1778_v27, %v679_v38  ;;  %v795_v47 = vmax.f32 %v763_v39, 0.0  ;;  %v855_v30 = vld [vmem:[#allocation8] sm:$0xff] (%p848_p1) }
 0x152   : > { %v812_v52 = vadd.f32 %v811_v50, %v781_v48  ;;  %v782_v54 = vmax.f32 %v750_v51, 0.0  ;;  %v728_v50 = vmul.f32 %v1210_v9, %v1778_v27  ;;  %v765_v51 = vadd.f32 %v1789_v34, %v726_v43 }
 0x153   : > { %v766_v55 = vadd.f32 %v1789_v34, %v727_v33  ;;  %v840_v26 = vstv %s1571_s27  ;;  %v1589_v9 = vmov 0.0  }
 0x154   : > { %v813_v59 = vadd.f32 %v812_v52, %v782_v54  ;;  %v796_v52 = vmax.f32 %v764_v45, 0.0  ;;  %v729_v54 = vmul.f32 %v1211_v24, %v1778_v27  ;;  %v767_v56 = vadd.f32 %v1789_v34, %v728_v50  ;;  %v858_v24 = vld [vmem:[#allocation8 + $0x18] sm:$0xff] (%p848_p1) }
 0x156   : > { %v814_v62 = vadd.f32 %v813_v59, %v783_v57  ;;  %v797_v57 = vmax.f32 %v765_v51, 0.0  ;;  %v768_v59 = vadd.f32 %v1789_v34, %v729_v54 }
 0x158   : > { %v815_v40 = vadd.f32 %v814_v62, %v784_v61  ;;  %v798_v61 = vmax.f32 %v766_v55, 0.0  ;;  %v799_v62 = vmax.f32 %v767_v56, 0.0  ;;  %v800_v0 = vmax.f32 %v768_v59, 0.0 }
 0x15a   : > { %v816_v6 = vadd.f32 %v815_v40, %v785_v3  ;;  %v838_v3 = vlaneseq }
 0x15c   : > { %v817_v11 = vadd.f32 %v816_v6, %v786_v5  ;;  %v839_v27 = vshrl.u32 %v838_v3, 7 }
 0x15e   : > { %v818_v14 = vadd.f32 %v817_v11, %v787_v10  ;;  %vm841_vm0 = vcmp.eq.s32.totalorder %v839_v27, %v840_v26 }
 0x15f   : > { %v1111_v10 = vsel %vm841_vm0, 1.0, %v1589_v9 }
 0x160   : > { %v819_v18 = vadd.f32 %v818_v14, %v788_v13  ;;  %v870_v13 = vld [vmem:[#allocation8 + $0x78] sm:$0xff] (%p848_p1)  ;;  %v1590_v14 = vmov (%p848_p1), 0.0  }
 0x161   : > { %1212 = vmatprep.subr.mxu0 (%p848_p1), %v1590_v14  ;;  %1244 = vmatprep.mubr.msk.f32.mxu0 (%p848_p1), %vm1591_vm1, %v1590_v14 }
 0x162   : > { %v820_v21 = vadd.f32 %v819_v18, %v789_v19  ;;  %1213 = vmatpush3.msra.mxu0 (%p848_p1), %v870_v13  ;;  %v865_v19 = vld [vmem:[#allocation8 + $0x50] sm:$0xff] (%p848_p1)  ;;  %v864_v18 = vld [vmem:[#allocation8 + $0x48] sm:$0xff] (%p848_p1) }
 0x163   : > { %1214 = vmatprep.subr.mxu0 (%p848_p1), %v1590_v14 }
 0x164   : > { %v821_v28 = vadd.f32 %v820_v21, %v790_v49  ;;  %1215 = vmatpush3.msra.mxu0 (%p848_p1), %v869_v15  ;;  %v862_v21 = vld [vmem:[#allocation8 + $0x38] sm:$0xff] (%p848_p1)  ;;  %v860_v49 = vld [vmem:[#allocation8 + $0x28] sm:$0xff] (%p848_p1) }
 0x165   : > { %1216 = vmatprep.subr.mxu0 (%p848_p1), %v1590_v14 }
 0x166   : > { %v822_v35 = vadd.f32 %v821_v28, %v791_v25  ;;  %1217 = vmatpush3.msra.mxu0 (%p848_p1), %v868_v60  ;;  %v857_v25 = vld [vmem:[#allocation8 + $0x10] sm:$0xff] (%p848_p1) }
 0x167   : > { %1218 = vmatprep.subr.mxu0 (%p848_p1), %v1590_v14 }
 0x168   : > { %v823_v42 = vadd.f32 %v822_v35, %v792_v31  ;;  %1219 = vmatpush3.msra.mxu0 (%p848_p1), %v867_v16  ;;  %v1113_v35 = vld [vmem:[%s1925_s5] ss:$0 sm:$0xff] (%p848_p1) }
 0x169   : > { %1220 = vmatprep.subr.mxu0 (%p848_p1), %v1590_v14 }
 0x16a   : > { %v824_v44 = vadd.f32 %v823_v42, %v793_v41  ;;  %1221 = vmatpush3.msra.mxu0 (%p848_p1), %v866_v17 }
 0x16b   : > { %1222 = vmatprep.subr.mxu0 (%p848_p1), %v1590_v14 }
 0x16c   : > { %v825_v48 = vadd.f32 %v824_v44, %v794_v46  ;;  %1223 = vmatpush3.msra.mxu0 (%p848_p1), %v865_v19 }
 0x16d   : > { %1224 = vmatprep.subr.mxu0 (%p848_p1), %v1590_v14 }
 0x16e   : > { %v826_v53 = vadd.f32 %v825_v48, %v795_v47  ;;  %1225 = vmatpush3.msra.mxu0 (%p848_p1), %v864_v18 }
 0x16f   : > { %1226 = vmatprep.subr.mxu0 (%p848_p1), %v1590_v14 }
 0x170   : > { %v827_v58 = vadd.f32 %v826_v53, %v796_v52  ;;  %1227 = vmatpush3.msra.mxu0 (%p848_p1), %v863_v20 }
 0x171   : > { %1228 = vmatprep.subr.mxu0 (%p848_p1), %v1590_v14 }
 0x172   : > { %v828_v29 = vadd.f32 %v827_v58, %v797_v57  ;;  %1229 = vmatpush3.msra.mxu0 (%p848_p1), %v862_v21 }
 0x173   : > { %1230 = vmatprep.subr.mxu0 (%p848_p1), %v1590_v14 }
 0x174   : > { %v829_v63 = vadd.f32 %v828_v29, %v798_v61  ;;  %1231 = vmatpush3.msra.mxu0 (%p848_p1), %v861_v22 }
 0x175   : > { %1232 = vmatprep.subr.mxu0 (%p848_p1), %v1590_v14 }
 0x176   : > { %v830_v1 = vadd.f32 %v829_v63, %v799_v62  ;;  %1233 = vmatpush3.msra.mxu0 (%p848_p1), %v860_v49 }
 0x177   : > { %1234 = vmatprep.subr.mxu0 (%p848_p1), %v1590_v14 }
 0x178   : > { %v831_v2 = vadd.f32 %v830_v1, %v800_v0  ;;  %1235 = vmatpush3.msra.mxu0 (%p848_p1), %v859_v23 }
 0x179   : > { %1236 = vmatprep.subr.mxu0 (%p848_p1), %v1590_v14 }
 0x17a   : > { %v832_v40 = vrot.slane %v831_v2, 4  ;;  %1237 = vmatpush3.msra.mxu0 (%p848_p1), %v858_v24 }
 0x17b   : > { %1238 = vmatprep.subr.mxu0 (%p848_p1), %v1590_v14 }
 0x17c   : > { %v833_v4 = vadd.f32 %v832_v40, %v831_v2  ;;  %1239 = vmatpush3.msra.mxu0 (%p848_p1), %v857_v25 }
 0x17d   : > { %1240 = vmatprep.subr.mxu0 (%p848_p1), %v1590_v14 }
 0x17e   : > { %v834_v5 = vrot.slane %v833_v4, 2  ;;  %1241 = vmatpush3.msra.mxu0 (%p848_p1), %v856_v7 }
 0x17f   : > { %1242 = vmatprep.subr.mxu0 (%p848_p1), %v1590_v14 }
 0x180   : > { %v835_v6 = vadd.f32 %v834_v5, %v833_v4  ;;  %1243 = vmatpush3.msra.mxu0 (%p848_p1), %v855_v30 }
 0x182   : > { %v836_v8 = vrot.slane %v835_v6, 1 }
 0x184   : > { %v837_v11 = vadd.f32 %v836_v8, %v835_v6 }
 0x186   : > { %v845_v34 = vmul.f32 %v1111_v10, %v837_v11  ;;  %852 = sbr.rel (!%p848_p1) target bundleno = 912 (0x390), region = 64 }
 0x188   : > { %v846_v12 = vadd.f32 %v845_v34, %v844_v32 }
 0x18a   : > { %847 = vst [vmem:[#allocation2] sm:$0x3] %v846_v12 }
 0x191   : > { %v853_v28 = vld [vmem:[#allocation2] sm:$0x3] }
 0x192   : > { %v854_v31 = vmul.f32 0.00390625, %v853_v28 }
 0x194   : > { %1245 = vmatmul.mubr.f32.vlgmr.msra.gmra.mxu0 %v854_v31 }
 0x254   : > { %v944_v36 = vpop.f32.mrf.mxu0 }
 0x255   : > { %v945_v37 = vadd.f32 %v1113_v35, %v944_v36 }
 0x256   : > { %v1246_v38 = vpop.f32.mrf.mxu0 }
 0x257   : > { %948 = vst [vmem:[#allocation9] sm:$0x3] %v945_v37  ;;  %v950_v39 = vsel %vm949_vm2, %v945_v37, -inf }
 0x258   : > { %951 = vmax.xlane.f32.xlu0 %v950_v39 }
 0x2e1   : > { %v952_v41 = vpop.xlane.xlu0 %951 }
 0x2e2   : > { %v953_v42 = vsub.f32 %v945_v37, %v952_v41 }
 0x2e4   : > { %v954_v43 = vmul.f32 1.442695, %v953_v42 }
 0x2e6   : > { %1385 = vpow2.f32 %v954_v43 }
 0x2f3   : > { %v1386_v44 = vpop.eup %1385 }
 0x2f4   : > { %v956_v45 = vsel %vm949_vm2, %v1386_v44, 0.0 }
 0x2f5   : > { %957 = vadd.xlane.f32.xlu0 %v956_v45 }
 0x37e   : > { %v958_v46 = vpop.xlane.xlu0 %957 }
 0x37f   : > { %1387 = vrcp.f32 %v958_v46 }
 0x38c   : > { %v1388_v33 = vpop.eup %1387 }
 0x38d   : > { %v960_v47 = vmul.f32 %v1388_v33, %v1386_v44 }
 0x38f   : > { %961 = vst [vmem:[#allocation10] sm:$0x3] %v960_v47 }
 0x390 PF: > { %s1938_s18 = sadd.s32 4294967295, %s1579_s29   ;;  %s1592_s11 = smov [#allocation9]  }
 0x391   : > { %p1876_p4 = scmp.eq.s32.totalorder %s1938_s18, 1  ;;  %s969_s19 = sshll.u32 %s1592_s11, 4  ;;  %s970_s19 = int_to_ptr.vmem [resolvable:$true] %s969_s19 }
 0x392   : > { %s1593_s13 = smov [#allocation10]   ;;  %s1469_s24 = scalar_lea.vmem %s970_s19, 32 }
 0x393   : > { %s980_s20 = sshll.u32 %s1593_s13, 4  ;;  %p1470_p3 = scmp.ne.s32.totalorder %s970_s19, %s1469_s24  ;;  %s981_s20 = int_to_ptr.vmem [resolvable:$true] %s980_s20 }
 0x394   : > { %p1476_p10 = scmp.lt.s32.totalorder %s970_s19, %s970_s19  ;;  %p1477_p11 = scmp.lt.s32.totalorder %s1469_s24, %s1469_s24 }
 0x395   : > { %p1471_p6 = pnand %p1470_p3, %p1876_p4 }
 0x396   : > { %p1478_p12 = por %p1477_p11, %p1476_p10 }
 0x397   : > { %p1472_p7 = pneg %p1471_p6 }
 0x399   : > { %p1479_p13 = pnand %p1478_p12, %p1472_p7 }
 0x39b   : > { %1482 = shalt.err (!%p1479_p13)
}
 0x39c   : > { %1274 = dma.vmem_to_hbm [thread:$0]  (%p1876_p4), %s970_s19, 32, %s1926_s6, [#allocation5]  }
 0x39d   : > { %s1493_s23 = scalar_lea.vmem %s981_s20, 32  ;;  %p1500_p9 = scmp.lt.s32.totalorder %s981_s20, %s981_s20 }
 0x39e   : > { %p1494_p8 = scmp.ne.s32.totalorder %s981_s20, %s1493_s23  ;;  %p1501_p5 = scmp.lt.s32.totalorder %s1493_s23, %s1493_s23 }
 0x3a0   : > { %p1495_p0 = pnand %p1494_p8, %p1876_p4  ;;  %p1502_p1 = por %p1501_p5, %p1500_p9 }
 0x3a2   : > { %p1496_p2 = pneg %p1495_p0 }
 0x3a4   : > { %p1503_p3 = pnand %p1502_p1, %p1496_p2 }
 0x3a6   : > { %1506 = shalt.err (!%p1503_p3)
}
 0x3a7   : > { %1276 = dma.vmem_to_hbm [thread:$0]  (%p1876_p4), %s981_s20, 32, %s1927_s7, [#allocation11]  }
 0x3a8   : > { %1550 = dma.done.wait (%p1876_p4), [#allocation5], 32  }
 0x3a9   : > { %1552 = vsyncadd (%p1876_p4), [#allocation5], 4294967264 }
 0x3aa   : > { %1554 = dma.done.wait (%p1876_p4), [#allocation11], 32  }
 0x3ab   : > { %1556 = vsyncadd (%p1876_p4), [#allocation11], 4294967264 }
 0x3ac PF: > { %s24_s29 = sadd.s32 1, %s1579_s29   ;;  %s1940_s24 = smov %s1563_s25 }
 0x3ad   : > { %p21_p6 = scmp.ge.s32.totalorder %s24_s29, 4   ;;  %s1941_s25 = smov %s1567_s26 }
 0x3ae   : > { %s1942_s26 = smov %s1724_s21  ;;  %s1943_s27 = smov %s1575_s28 }
 0x3af   : > { %s1944_s28 = smov %s1946_s12  ;;  %23 = sbr.rel (!%p21_p6) target bundleno = 7 (0x7), region = 105 }
 0x3b4   :  { %997 = vsyncpa [#allocation4], 1 }
 0x3b5   :  { %999 = vsyncpa [#allocation4 + $0x1], 1 }
 0x3b6   :  { %1000 = vsyncpa [#allocation7], 1 }
 0x3b7   :  { %1001 = vsyncpa [#allocation5], 1 }
 0x3b8   :  { %1003 = vsyncpa [#allocation5 + $0x1], 1 }
 0x3b9   :  { %1004 = vsyncpa [#allocation11], 1 }

</bundles_post_ra>
